<compile_context>
chip_gen: v5e
topology: v5e:2x2
jax: 0.10.0
libtpu: 0.0.40
codegen_flags: <defaults>
</compile_context>

<pallas_src>
import math
import functools

import jax
import jax.numpy as jnp
from jax import lax
from jax.experimental import pallas as pl
from jax.experimental.pallas import tpu as pltpu

_VMEM_BUDGET = 8 * 1024 * 1024  # per double-buffered input tile (v7x-safe)


def _round_up(v, m):
    return (v + m - 1) // m * m


def _row_tile(R, row_bytes, cap=1024):
    """Largest row tile (multiple of 8, <= cap) whose double-buffered input
    tile fits the VMEM budget; falls back to the full extent when small."""
    tr = max(8, min(cap, _VMEM_BUDGET // max(1, 2 * row_bytes)))
    tr = (tr // 8) * 8
    if tr >= R:
        return R
    return max(8, tr)


# ----------------------------- Pallas kernels ------------------------------

def _avg_pool2d_kernel(x_ref, f_ref, o_ref, *, r):
    # x_ref: (TR, r, W)  rows are (n, c, ho) triples, middle axis = the r H-taps
    # f_ref: (W, Wo)     fold matrix: f[j, wo] = 1/(r*r) if j // r == wo else 0
    # o_ref: (TR, Wo)
    x = x_ref[...].astype(jnp.float32)
    s = x[:, 0, :]
    for kh in range(1, r):                       # H-tap fold: cheap VPU adds
        s = s + x[:, kh, :]
    # W-tap fold + averaging scale as a small matmul (MXU is otherwise idle).
    o_ref[...] = jnp.dot(s, f_ref[...],
                         preferred_element_type=jnp.float32).astype(o_ref.dtype)


def _avg_pool1d_kernel(x_ref, f_ref, o_ref):
    # x_ref: (TR, L) ; f_ref: (L, Lo) with 1/r weights ; o_ref: (TR, Lo)
    o_ref[...] = jnp.dot(x_ref[...].astype(jnp.float32), f_ref[...],
                         preferred_element_type=jnp.float32).astype(o_ref.dtype)


def _conv_matmul_kernel(x_ref, w_ref, o_ref):
    # x_ref: (Kpad, TP)  im2col patch tile (ones-row for bias included)
    # w_ref: (Cop, Kpad) flattened weight (+ bias column); constant index_map ->
    #                    stays resident in VMEM across the P-tile grid
    # o_ref: (Cop, TP)   lane-dense output tile
    o_ref[...] = jnp.dot(w_ref[...], x_ref[...],
                         preferred_element_type=jnp.float32).astype(o_ref.dtype)


# ------------------------------- avg pool -----------------------------------

def _fold_matrix(win, wout, r, scale):
    j = jnp.arange(win)[:, None]
    k = jnp.arange(wout)[None, :]
    return ((j // r) == k).astype(jnp.float32) * scale


def _avg_pool_2d(x, r):
    N, C, H, W = x.shape
    Ho, Wo = H // r, W // r
    Wsl = Wo * r
    xc = x[:, :, :Ho * r, :Wsl]                 # floor behavior (ceil_mode=False)
    R = N * C * Ho
    xr = xc.reshape(R, r, Wsl)                  # pure row-major reshape (no transpose)
    fold = _fold_matrix(Wsl, Wo, r, 1.0 / (r * r))
    TR = _row_tile(R, r * Wsl * x.dtype.itemsize)
    out = pl.pallas_call(
        functools.partial(_avg_pool2d_kernel, r=r),
        out_shape=jax.ShapeDtypeStruct((R, Wo), x.dtype),
        grid=(pl.cdiv(R, TR),),
        in_specs=[pl.BlockSpec((TR, r, Wsl), lambda i: (i, 0, 0)),
                  pl.BlockSpec((Wsl, Wo), lambda i: (0, 0))],
        out_specs=pl.BlockSpec((TR, Wo), lambda i: (i, 0)),
        compiler_params=pltpu.CompilerParams(dimension_semantics=("parallel",)),
    )(xr, fold)
    return out.reshape(N, C, Ho, Wo)


def _avg_pool_1d(x, r):
    N, C, L = x.shape
    Lo = L // r
    Lsl = Lo * r
    xc = x[:, :, :Lsl]
    R = N * C
    xr = xc.reshape(R, Lsl)                     # pure reshape
    fold = _fold_matrix(Lsl, Lo, r, 1.0 / r)
    TR = _row_tile(R, Lsl * x.dtype.itemsize)
    out = pl.pallas_call(
        _avg_pool1d_kernel,
        out_shape=jax.ShapeDtypeStruct((R, Lo), x.dtype),
        grid=(pl.cdiv(R, TR),),
        in_specs=[pl.BlockSpec((TR, Lsl), lambda i: (i, 0)),
                  pl.BlockSpec((Lsl, Lo), lambda i: (0, 0))],
        out_specs=pl.BlockSpec((TR, Lo), lambda i: (i, 0)),
        compiler_params=pltpu.CompilerParams(dimension_semantics=("parallel",)),
    )(xr, fold)
    return out.reshape(N, C, Lo)


# ------------------------------ strided conv ---------------------------------

def _conv_matmul(xcol, wmat, bias, out_dtype, compute_dtype):
    """out[co, p] = bias[co] + sum_k wmat[co, k] * xcol[k, p], returned as (Co, P)."""
    Co, Kdim = wmat.shape
    P = xcol.shape[1]
    cdt = compute_dtype
    bytes_el = jnp.dtype(cdt).itemsize

    Kpad = _round_up(Kdim + 1, 8)               # +1: ones-row carries the bias
    Cop = _round_up(Co, 8)

    # Lane-dense P tile (multiple of 128, up to 512); keep the double-buffered
    # x tile comfortably inside the v7x-safe VMEM budget.
    TP = 512
    while TP > 128 and Kpad * TP * bytes_el * 2 > _VMEM_BUDGET:
        TP //= 2
    TP = min(TP, _round_up(P, 128))
    Ppad = _round_up(P, TP)

    xcol_c = jnp.concatenate([xcol.astype(cdt), jnp.ones((1, P), cdt)], axis=0)
    xcol_p = jnp.pad(xcol_c, ((0, Kpad - (Kdim + 1)), (0, Ppad - P)))
    wb = jnp.concatenate([wmat, bias.reshape(Co, 1)], axis=1).astype(cdt)
    wb_p = jnp.pad(wb, ((0, Cop - Co), (0, Kpad - (Kdim + 1))))

    out = pl.pallas_call(
        _conv_matmul_kernel,
        out_shape=jax.ShapeDtypeStruct((Cop, Ppad), out_dtype),
        grid=(Ppad // TP,),
        in_specs=[pl.BlockSpec((Kpad, TP), lambda i: (0, i)),
                  pl.BlockSpec((Cop, Kpad), lambda i: (0, 0))],
        out_specs=pl.BlockSpec((Cop, TP), lambda i: (0, i)),
        compiler_params=pltpu.CompilerParams(dimension_semantics=("parallel",)),
    )(xcol_p, wb_p)
    return out[:Co, :P]


def _conv_down_2d(x, w, b, r, p, compute_dtype):
    # Conv2d(kernel_size=3, stride=r, padding=p, padding_mode='zeros')
    N, C, H, W = x.shape
    Co, _, KH, KW = w.shape
    Ho = (H + 2 * p - KH) // r + 1
    Wo = (W + 2 * p - KW) // r + 1
    xp = jnp.pad(x, ((0, 0), (0, 0), (p, p), (p, p)))
    taps = []
    for kh in range(KH):
        for kw in range(KW):
            sl = lax.slice(xp, (0, 0, kh, kw),
                           (N, C, kh + (Ho - 1) * r + 1, kw + (Wo - 1) * r + 1),
                           (1, 1, r, r))                      # (N, C, Ho, Wo)
            taps.append(sl)
    xcol = jnp.stack(taps, axis=0)                            # (KT, N, C, Ho, Wo)
    xcol = jnp.moveaxis(xcol, 2, 1).reshape(KH * KW * C, N * Ho * Wo)
    wmat = w.transpose(0, 2, 3, 1).reshape(Co, KH * KW * C)   # rows/cols ordered (kh,kw,c)
    out = _conv_matmul(xcol, wmat, b, x.dtype, compute_dtype) # (Co, N*Ho*Wo)
    return out.reshape(Co, N, Ho, Wo).transpose(1, 0, 2, 3)


def _conv_down_1d(x, w, b, r, p, compute_dtype):
    # Conv1d(kernel_size=3, stride=r, padding=p, padding_mode='zeros')
    N, C, L = x.shape
    Co, _, K = w.shape
    Lo = (L + 2 * p - K) // r + 1
    xp = jnp.pad(x, ((0, 0), (0, 0), (p, p)))
    taps = []
    for k in range(K):
        sl = lax.slice(xp, (0, 0, k), (N, C, k + (Lo - 1) * r + 1), (1, 1, r))
        taps.append(sl)                                       # (N, C, Lo)
    xcol = jnp.stack(taps, axis=0)                            # (K, N, C, Lo)
    xcol = jnp.moveaxis(xcol, 2, 1).reshape(K * C, N * Lo)
    wmat = w.transpose(0, 2, 1).reshape(Co, K * C)            # (k, c) ordering
    out = _conv_matmul(xcol, wmat, b, x.dtype, compute_dtype) # (Co, N*Lo)
    return out.reshape(Co, N, Lo).transpose(1, 0, 2)


# --------------------------- Downsample module ------------------------------

class Downsample:
    """JAX/Pallas port of the PyTorch Downsample module (dims=1 or 2)."""

    def __init__(self, n_channels, down_rate=2, use_conv=False, dims=2,
                 n_out_channels=None, padding_mode='zeros', padding=1,
                 conv_compute_dtype=jnp.bfloat16, *, key=None):
        assert dims in (1, 2)  # TODO(synk): dims=3 (stride (1, r, r)) not implemented
        assert padding_mode == 'zeros'
        self.n_channels = n_channels
        self.down_rate = down_rate
        self.n_out_channels = n_out_channels or n_channels
        self.use_conv = use_conv
        self.dims = dims
        self.padding = padding
        self.conv_compute_dtype = conv_compute_dtype
        if use_conv:
            if key is None:
                key = jax.random.PRNGKey(0)
            kw, kb = jax.random.split(key)
            ksz = (3,) * dims
            fan_in = n_channels * (3 ** dims)
            bound = 1.0 / math.sqrt(fan_in)
            self.weight = jax.random.uniform(
                kw, (self.n_out_channels, n_channels) + ksz,
                minval=-bound, maxval=bound, dtype=jnp.float32)
            self.bias = jax.random.uniform(
                kb, (self.n_out_channels,),
                minval=-bound, maxval=bound, dtype=jnp.float32)
        else:
            assert self.n_channels == self.n_out_channels

    def __call__(self, x):
        assert x.shape[1] == self.n_channels
        if self.use_conv:
            if self.dims == 2:
                return _conv_down_2d(x, self.weight, self.bias,
                                     self.down_rate, self.padding,
                                     self.conv_compute_dtype)
            return _conv_down_1d(x, self.weight, self.bias,
                                 self.down_rate, self.padding,
                                 self.conv_compute_dtype)
        if self.dims == 2:
            return _avg_pool_2d(x, self.down_rate)
        return _avg_pool_1d(x, self.down_rate)


# ------------------------------ references ----------------------------------

def _ref_avgpool(x, r, dims):
    if dims == 2:
        window, strides = (1, 1, r, r), (1, 1, r, r)
    else:
        window, strides = (1, 1, r), (1, 1, r)
    s = lax.reduce_window(x, 0.0, lax.add, window, strides, 'VALID')
    return s / float(r ** dims)


def _ref_conv(x, w, b, r, p, dims):
    if dims == 2:
        out = lax.conv_general_dilated(
            x, w, (r, r), [(p, p), (p, p)],
            dimension_numbers=('NCHW', 'OIHW', 'NCHW'))
        return out + b[None, :, None, None]
    out = lax.conv_general_dilated(
        x, w, (r,), [(p, p)], dimension_numbers=('NCH', 'OIH', 'NCH'))
    return out + b[None, :, None]


# --------------------------------- main --------------------------------------

if __name__ == "__main__":
    key = jax.random.PRNGKey(0)
    k1, k2, k3 = jax.random.split(key, 3)

    x2d = jax.random.normal(k1, (2, 4, 16, 16), dtype=jnp.float32)
    x1d = jax.random.normal(k2, (2, 4, 16), dtype=jnp.float32)

    # Default config: AvgPool2d(kernel=2, stride=2)
    ds_pool2d = Downsample(4, dims=2, use_conv=False)
    y_pool2d = jax.block_until_ready(ds_pool2d(x2d))
    assert y_pool2d.shape == (2, 4, 8, 8)
    assert jnp.allclose(y_pool2d, _ref_avgpool(x2d, 2, 2), atol=1e-2, rtol=1e-2)

    # Conv2d(4 -> 6, kernel=3, stride=2, padding=1)  [bf16 matmul, f32 accumulate]
    ds_conv2d = Downsample(4, dims=2, use_conv=True, n_out_channels=6, key=k3)
    y_conv2d = jax.block_until_ready(ds_conv2d(x2d))
    assert y_conv2d.shape == (2, 6, 8, 8)
    assert jnp.allclose(y_conv2d,
                        _ref_conv(x2d, ds_conv2d.weight, ds_conv2d.bias, 2, 1, 2),
                        atol=3e-2, rtol=3e-2)

    # AvgPool1d(kernel=2, stride=2)
    ds_pool1d = Downsample(4, dims=1, use_conv=False)
    y_pool1d = jax.block_until_ready(ds_pool1d(x1d))
    assert y_pool1d.shape == (2, 4, 8)
    assert jnp.allclose(y_pool1d, _ref_avgpool(x1d, 2, 1), atol=1e-2, rtol=1e-2)

    # Conv1d(4 -> 4, kernel=3, stride=2, padding=1)
    ds_conv1d = Downsample(4, dims=1, use_conv=True, key=k3)
    y_conv1d = jax.block_until_ready(ds_conv1d(x1d))
    assert y_conv1d.shape == (2, 4, 8)
    assert jnp.allclose(y_conv1d,
                        _ref_conv(x1d, ds_conv1d.weight, ds_conv1d.bias, 2, 1, 1),
                        atol=3e-2, rtol=3e-2)

    print("KERNEL_OK")
</pallas_src>

<mosaic_0001>
module attributes {stable_mosaic.version = 11 : i64} {
  func.func @_avg_pool2d_kernel(%arg0: i32, %arg1: memref<64x2x16xf32, #tpu.memory_space<vmem>>, %arg2: memref<16x8xf32, #tpu.memory_space<vmem>>, %arg3: memref<64x8xf32, #tpu.memory_space<vmem>>) attributes {dimension_semantics = [#tpu.dimension_semantics<parallel>], iteration_bounds = array<i64: 1>, scalar_prefetch = 0 : i64, scratch_operands = 0 : i64, tpu.core_type = #tpu.core_type<tc>, window_params = [{transform_indices = @transform_0, window_bounds = array<i64: 64, 2, 16>}, {pipeline_mode = #tpu.pipeline_mode<synchronous>, transform_indices = @transform_1, window_bounds = array<i64: 16, 8>}, {transform_indices = @transform_2, window_bounds = array<i64: 64, 8>}]} {
    %c0 = arith.constant 0 : index
    %c0_0 = arith.constant 0 : index
    %c0_1 = arith.constant 0 : index
    %0 = vector.load %arg1[%c0, %c0_0, %c0_1] : memref<64x2x16xf32, #tpu.memory_space<vmem>>, vector<64x2x16xf32>
    %1 = vector.extract_strided_slice %0 {offsets = [0, 0, 0], sizes = [64, 1, 16], strides = [1, 1, 1]} : vector<64x2x16xf32> to vector<64x1x16xf32>
    %2 = vector.shape_cast %1 : vector<64x1x16xf32> to vector<64x16xf32>
    %3 = vector.extract_strided_slice %0 {offsets = [0, 1, 0], sizes = [64, 1, 16], strides = [1, 1, 1]} : vector<64x2x16xf32> to vector<64x1x16xf32>
    %4 = vector.shape_cast %3 : vector<64x1x16xf32> to vector<64x16xf32>
    %5 = arith.addf %2, %4 : vector<64x16xf32>
    %c0_2 = arith.constant 0 : index
    %c0_3 = arith.constant 0 : index
    %6 = vector.load %arg2[%c0_2, %c0_3] : memref<16x8xf32, #tpu.memory_space<vmem>>, vector<16x8xf32>
    %cst = arith.constant dense<0.000000e+00> : vector<64x8xf32>
    %7 = tpu.matmul %5, %6, %cst {dimension_numbers = #tpu.dot_dimension_numbers<[1], [0], [0], [1], [0, 0, 1, 1], [], []>} : vector<64x16xf32>, vector<16x8xf32>, vector<64x8xf32> -> vector<64x8xf32>
    %c0_4 = arith.constant 0 : index
    %c0_5 = arith.constant 0 : index
    %8 = vector.load %arg3[%c0_4, %c0_5] : memref<64x8xf32, #tpu.memory_space<vmem>>, vector<64x8xf32>
    tpu.vector_store %arg3[%c0_4, %c0_5], %7 {strides = array<i32>} : memref<64x8xf32, #tpu.memory_space<vmem>>, vector<64x8xf32>,
    return
  }
  func.func @transform_0(%arg0: i32) -> (i32, i32, i32) {
    %c0_i32 = arith.constant 0 : i32
    %c0_i32_0 = arith.constant 0 : i32
    %c0_i32_1 = arith.constant 0 : i32
    return %arg0, %c0_i32, %c0_i32_0 : i32, i32, i32
  }
  func.func @transform_1(%arg0: i32) -> (i32, i32) {
    %c0_i32 = arith.constant 0 : i32
    %c0_i32_0 = arith.constant 0 : i32
    %c0_i32_1 = arith.constant 0 : i32
    return %c0_i32, %c0_i32_0 : i32, i32
  }
  func.func @transform_2(%arg0: i32) -> (i32, i32) {
    %c0_i32 = arith.constant 0 : i32
    %c0_i32_0 = arith.constant 0 : i32
    return %arg0, %c0_i32 : i32, i32
  }
}

</mosaic_0001>

<bundles_post_ra>
// kernel: tpu_custom_call.1
= control target key start
LH: loop header
LB: loop body
LE: loop exit
PB: predicated region body
PF: predicated region fallthrough
CT: control target
= control target key end

     0   :  { %vm398_vm0 = vcmask 1041409   ;;  %vm401_vm1 = vcmask 1042434   ;;  %vm404_vm2 = vcmask 1043459   ;;  %vm407_vm3 = vcmask 1044484   ;;  %s910_s1 = inlined_call_operand.vmem [shape: f32[16,8], index: 1, kind: input, shape index: {}]   ;;  %s911_s0 = inlined_call_operand.vmem [shape: f32[64,2,16], index: 0, kind: input, shape index: {}]   ;;  %s912_s2 = inlined_call_operand.vmem [shape: f32[64,8], index: 2, kind: output, shape index: {}]  }
   0x1   :  { %v332_v0 = vld [vmem:[%s910_s1 + $0x8] sm:$0xff]  ;;  %v331_v1 = vld [vmem:[%s910_s1] sm:$0xff]  ;;  %vm410_vm4 = vcmask 1045509   ;;  %vm413_vm5 = vcmask 1046534   ;;  %vm416_vm6 = vcmask 1047559   ;;  %vm516_vm7 = vcmask 130048  }
   0x2   :  { %v43_v2 = vld [vmem:[%s911_s0 + $0x40] sm:$0x3]  ;;  %596 = vmatpush.msra.mxu2 %v332_v0  ;;  %597 = vmatpush.msra.mxu3 %v332_v0  ;;  %v44_v3 = vld [vmem:[%s911_s0 + $0x42] sm:$0x3]  ;;  %v45_v4 = vld [vmem:[%s911_s0 + $0x44] sm:$0x3] }
   0x3   :  { %v46_v5 = vld [vmem:[%s911_s0 + $0x46] sm:$0x3]  ;;  %v47_v6 = vld [vmem:[%s911_s0 + $0x48] sm:$0x3]  ;;  %v48_v7 = vld [vmem:[%s911_s0 + $0x4a] sm:$0x3]  ;;  %547 = vmatpush.msra.mxu0 %v332_v0  ;;  %595 = vmatpush.msra.mxu1 %v332_v0 }
   0x4   :  { %v49_v8 = vld [vmem:[%s911_s0 + $0x4c] sm:$0x3]  ;;  %599 = vmatpush.msra.mxu2 %v331_v1  ;;  %600 = vmatpush.msra.mxu3 %v331_v1  ;;  %v50_v9 = vld [vmem:[%s911_s0 + $0x4e] sm:$0x3]  ;;  %v171_v10 = vrot.slane %v43_v2, 1  ;;  %v172_v11 = vrot.slane %v44_v3, 1 }
   0x5   :  { %v173_v12 = vrot.slane %v45_v4, 1  ;;  %v174_v13 = vrot.slane %v46_v5, 1  ;;  %v175_v14 = vrot.slane %v47_v6, 1  ;;  %v176_v15 = vrot.slane %v48_v7, 1  ;;  %548 = vmatpush.msra.mxu0 %v331_v1  ;;  %598 = vmatpush.msra.mxu1 %v331_v1  ;;  %v59_v22 = vld [vmem:[%s911_s0 + $0x60] sm:$0x3] }
   0x6   :  { %v177_v16 = vrot.slane %v49_v8, 1  ;;  %v178_v17 = vrot.slane %v50_v9, 1  ;;  %v299_v18 = vadd.f32 %v171_v10, %v43_v2  ;;  %v300_v19 = vadd.f32 %v172_v11, %v44_v3  ;;  %v60_v23 = vld [vmem:[%s911_s0 + $0x62] sm:$0x3]  ;;  %v61_v24 = vld [vmem:[%s911_s0 + $0x64] sm:$0x3] }
   0x7   :  { %v301_v20 = vadd.f32 %v173_v12, %v45_v4  ;;  %v302_v21 = vadd.f32 %v174_v13, %v46_v5  ;;  %v303_v25 = vadd.f32 %v175_v14, %v47_v6  ;;  %v304_v26 = vadd.f32 %v176_v15, %v48_v7  ;;  %v62_v29 = vld [vmem:[%s911_s0 + $0x66] sm:$0x3]  ;;  %v63_v30 = vld [vmem:[%s911_s0 + $0x68] sm:$0x3]  ;;  %v64_v31 = vld [vmem:[%s911_s0 + $0x6a] sm:$0x3] }
   0x8   :  { %v305_v27 = vadd.f32 %v177_v16, %v49_v8  ;;  %v306_v28 = vadd.f32 %v178_v17, %v50_v9  ;;  %v460_v32 = vrot.slane %v300_v19, 7  ;;  %v65_v35 = vld [vmem:[%s911_s0 + $0x6c] sm:$0x3]  ;;  %v66_v40 = vld [vmem:[%s911_s0 + $0x6e] sm:$0x3]  ;;  %v187_v42 = vrot.slane %v59_v22, 1 }
   0x9   :  { %v462_v33 = vrot.slane %v301_v20, 6  ;;  %v464_v34 = vrot.slane %v302_v21, 5  ;;  %v466_v36 = vrot.slane %v303_v25, 4  ;;  %v468_v37 = vrot.slane %v304_v26, 3  ;;  %v11_v56 = vld [vmem:[%s911_s0] sm:$0x3] }
   0xa   :  { %v470_v38 = vrot.slane %v305_v27, 2  ;;  %v472_v39 = vrot.slane %v306_v28, 1  ;;  %v461_v41 = vsel %vm398_vm0, %v460_v32, %v299_v18  ;;  %v188_v43 = vrot.slane %v60_v23, 1  ;;  %v12_v61 = vld [vmem:[%s911_s0 + $0x2] sm:$0x3] }
   0xb   :  { %v463_v44 = vsel %vm401_vm1, %v462_v33, %v461_v41  ;;  %v189_v45 = vrot.slane %v61_v24, 1  ;;  %v190_v46 = vrot.slane %v62_v29, 1  ;;  %v191_v47 = vrot.slane %v63_v30, 1  ;;  %v13_v62 = vld [vmem:[%s911_s0 + $0x4] sm:$0x3] }
   0xc   :  { %v465_v48 = vsel %vm404_vm2, %v464_v34, %v463_v44  ;;  %v192_v49 = vrot.slane %v64_v31, 1  ;;  %v193_v50 = vrot.slane %v65_v35, 1  ;;  %v194_v51 = vrot.slane %v66_v40, 1  ;;  %v14_v63 = vld [vmem:[%s911_s0 + $0x6] sm:$0x3] }
   0xd   :  { %v467_v52 = vsel %vm407_vm3, %v466_v36, %v465_v48  ;;  %v315_v53 = vadd.f32 %v187_v42, %v59_v22  ;;  %v316_v54 = vadd.f32 %v188_v43, %v60_v23  ;;  %v317_v55 = vadd.f32 %v189_v45, %v61_v24  ;;  %v15_v4 = vld [vmem:[%s911_s0 + $0x8] sm:$0x3]  ;;  %v16_v5 = vld [vmem:[%s911_s0 + $0xa] sm:$0x3]  ;;  %v17_v10 = vld [vmem:[%s911_s0 + $0xc] sm:$0x3] }
   0xe   :  { %v469_v57 = vsel %vm410_vm4, %v468_v37, %v467_v52  ;;  %v318_v58 = vadd.f32 %v190_v46, %v62_v29  ;;  %v319_v59 = vadd.f32 %v191_v47, %v63_v30  ;;  %v320_v60 = vadd.f32 %v192_v49, %v64_v31  ;;  %v18_v15 = vld [vmem:[%s911_s0 + $0xe] sm:$0x3]  ;;  %v27_v32 = vld [vmem:[%s911_s0 + $0x20] sm:$0x3]  ;;  %v28_v33 = vld [vmem:[%s911_s0 + $0x22] sm:$0x3] }
   0xf   :  { %v471_v0 = vsel %vm413_vm5, %v470_v38, %v469_v57  ;;  %v321_v1 = vadd.f32 %v193_v50, %v65_v35  ;;  %v322_v2 = vadd.f32 %v194_v51, %v66_v40  ;;  %v488_v3 = vrot.slane %v316_v54, 7  ;;  %v29_v38 = vld [vmem:[%s911_s0 + $0x24] sm:$0x3]  ;;  %v31_v40 = vld [vmem:[%s911_s0 + $0x28] sm:$0x3] }
  0x10   :  { %v473_v6 = vsel %vm416_vm6, %v472_v39, %v471_v0  ;;  %v490_v7 = vrot.slane %v317_v55, 6  ;;  %v492_v8 = vrot.slane %v318_v58, 5  ;;  %v494_v9 = vrot.slane %v319_v59, 4  ;;  %v30_v39 = vld [vmem:[%s911_s0 + $0x26] sm:$0x3] }
  0x11   :  { %591 = vmatmul.msk.f32.vlgmr.msra.gmra.mxu2 %vm516_vm7, %v473_v6  ;;  %v489_v11 = vsel %vm398_vm0, %v488_v3, %v315_v53  ;;  %v496_v12 = vrot.slane %v320_v60, 3  ;;  %v498_v13 = vrot.slane %v321_v1, 2  ;;  %v500_v14 = vrot.slane %v322_v2, 1  ;;  %v32_v45 = vld [vmem:[%s911_s0 + $0x2a] sm:$0x3] }
  0x12   :  { %v491_v16 = vsel %vm401_vm1, %v490_v7, %v489_v11  ;;  %v139_v17 = vrot.slane %v11_v56, 1  ;;  %v140_v18 = vrot.slane %v12_v61, 1  ;;  %v141_v19 = vrot.slane %v13_v62, 1  ;;  %v33_v46 = vld [vmem:[%s911_s0 + $0x2c] sm:$0x3] }
  0x13   :  { %v493_v20 = vsel %vm404_vm2, %v492_v8, %v491_v16  ;;  %v142_v21 = vrot.slane %v14_v63, 1  ;;  %v143_v22 = vrot.slane %v15_v4, 1  ;;  %v144_v23 = vrot.slane %v16_v5, 1  ;;  %v34_v51 = vld [vmem:[%s911_s0 + $0x2e] sm:$0x3] }
  0x14   :  { %v495_v24 = vsel %vm407_vm3, %v494_v9, %v493_v20  ;;  %v145_v25 = vrot.slane %v17_v10, 1  ;;  %v146_v26 = vrot.slane %v18_v15, 1  ;;  %v267_v27 = vadd.f32 %v139_v17, %v11_v56  ;;  %v52_v9 = vld [vmem:[%s911_s0 + $0x52] sm:$0x3]  ;;  %v54_v11 = vld [vmem:[%s911_s0 + $0x56] sm:$0x3] }
  0x15   :  { %v497_v28 = vsel %vm410_vm4, %v496_v12, %v495_v24  ;;  %v268_v29 = vadd.f32 %v140_v18, %v12_v61  ;;  %v269_v30 = vadd.f32 %v141_v19, %v13_v62  ;;  %v270_v31 = vadd.f32 %v142_v21, %v14_v63  ;;  %v55_v16 = vld [vmem:[%s911_s0 + $0x58] sm:$0x3]  ;;  %v56_v17 = vld [vmem:[%s911_s0 + $0x5a] sm:$0x3] }
  0x16   :  { %v499_v34 = vsel %vm413_vm5, %v498_v13, %v497_v28  ;;  %v271_v35 = vadd.f32 %v143_v22, %v15_v4  ;;  %v272_v36 = vadd.f32 %v144_v23, %v16_v5  ;;  %v273_v37 = vadd.f32 %v145_v25, %v17_v10  ;;  %v51_v4 = vld [vmem:[%s911_s0 + $0x50] sm:$0x3]  ;;  %v53_v10 = vld [vmem:[%s911_s0 + $0x54] sm:$0x3]  ;;  %v57_v22 = vld [vmem:[%s911_s0 + $0x5c] sm:$0x3] }
  0x17   :  { %v501_v41 = vsel %vm416_vm6, %v500_v14, %v499_v34  ;;  %v274_v42 = vadd.f32 %v146_v26, %v18_v15  ;;  %v397_v43 = vrot.slane %v268_v29, 7  ;;  %v400_v44 = vrot.slane %v269_v30, 6 }
  0x18   :  { %593 = vmatmul.msk.f32.vlgmr.msra.gmra.mxu3 %vm516_vm7, %v501_v41  ;;  %v403_v47 = vrot.slane %v270_v31, 5  ;;  %v406_v48 = vrot.slane %v271_v35, 4  ;;  %v409_v49 = vrot.slane %v272_v36, 3  ;;  %v412_v50 = vrot.slane %v273_v37, 2 }
  0x19   :  { %v399_v52 = vsel %vm398_vm0, %v397_v43, %v267_v27  ;;  %v415_v53 = vrot.slane %v274_v42, 1  ;;  %v155_v54 = vrot.slane %v27_v32, 1  ;;  %v156_v55 = vrot.slane %v28_v33, 1  ;;  %v58_v27 = vld [vmem:[%s911_s0 + $0x5e] sm:$0x3] }
  0x1a   :  { %v402_v56 = vsel %vm401_vm1, %v400_v44, %v399_v52  ;;  %v157_v57 = vrot.slane %v29_v38, 1  ;;  %v158_v58 = vrot.slane %v30_v39, 1  ;;  %v159_v59 = vrot.slane %v31_v40, 1  ;;  %v67_v44 = vld [vmem:[%s911_s0 + $0x70] sm:$0x3] }
  0x1b   :  { %v405_v60 = vsel %vm404_vm2, %v403_v47, %v402_v56  ;;  %v160_v61 = vrot.slane %v32_v45, 1  ;;  %v161_v62 = vrot.slane %v33_v46, 1  ;;  %v162_v63 = vrot.slane %v34_v51, 1  ;;  %v71_v52 = vld [vmem:[%s911_s0 + $0x78] sm:$0x3] }
  0x1c   :  { %v408_v0 = vsel %vm407_vm3, %v406_v48, %v405_v60  ;;  %v283_v1 = vadd.f32 %v155_v54, %v27_v32  ;;  %v284_v2 = vadd.f32 %v156_v55, %v28_v33  ;;  %v285_v3 = vadd.f32 %v157_v57, %v29_v38  ;;  %v72_v57 = vld [vmem:[%s911_s0 + $0x7a] sm:$0x3] }
  0x1d   :  { %v411_v5 = vsel %vm410_vm4, %v409_v49, %v408_v0  ;;  %v286_v6 = vadd.f32 %v158_v58, %v30_v39  ;;  %v287_v7 = vadd.f32 %v159_v59, %v31_v40  ;;  %v288_v8 = vadd.f32 %v160_v61, %v32_v45  ;;  %v68_v45 = vld [vmem:[%s911_s0 + $0x72] sm:$0x3]  ;;  %v73_v58 = vld [vmem:[%s911_s0 + $0x7c] sm:$0x3] }
  0x1e   :  { %v414_v12 = vsel %vm413_vm5, %v412_v50, %v411_v5  ;;  %v289_v13 = vadd.f32 %v161_v62, %v33_v46  ;;  %v290_v14 = vadd.f32 %v162_v63, %v34_v51  ;;  %v432_v15 = vrot.slane %v284_v2, 7  ;;  %v69_v50 = vld [vmem:[%s911_s0 + $0x74] sm:$0x3]  ;;  %v70_v51 = vld [vmem:[%s911_s0 + $0x76] sm:$0x3] }
  0x1f   :  { %v417_v18 = vsel %vm416_vm6, %v415_v53, %v414_v12  ;;  %v434_v19 = vrot.slane %v285_v3, 6  ;;  %v436_v20 = vrot.slane %v286_v6, 5  ;;  %v438_v21 = vrot.slane %v287_v7, 4  ;;  %v74_v63 = vld [vmem:[%s911_s0 + $0x7e] sm:$0x3] }
  0x20   :  { %587 = vmatmul.msk.f32.vlgmr.msra.gmra.mxu0 %vm516_vm7, %v417_v18  ;;  %v433_v23 = vsel %vm398_vm0, %v432_v15, %v283_v1  ;;  %v440_v24 = vrot.slane %v288_v8, 3  ;;  %v442_v25 = vrot.slane %v289_v13, 2  ;;  %v444_v26 = vrot.slane %v290_v14, 1 }
  0x21   :  { %v435_v28 = vsel %vm401_vm1, %v434_v19, %v433_v23  ;;  %v179_v29 = vrot.slane %v51_v4, 1  ;;  %v180_v30 = vrot.slane %v52_v9, 1  ;;  %v181_v31 = vrot.slane %v53_v10, 1  ;;  %v22_v23 = vld [vmem:[%s911_s0 + $0x16] sm:$0x3] }
  0x22   :  { %v437_v32 = vsel %vm404_vm2, %v436_v20, %v435_v28  ;;  %v182_v33 = vrot.slane %v54_v11, 1  ;;  %v183_v34 = vrot.slane %v55_v16, 1  ;;  %v184_v35 = vrot.slane %v56_v17, 1  ;;  %v23_v28 = vld [vmem:[%s911_s0 + $0x18] sm:$0x3] }
  0x23   :  { %v439_v36 = vsel %vm407_vm3, %v438_v21, %v437_v32  ;;  %v185_v37 = vrot.slane %v57_v22, 1  ;;  %v186_v38 = vrot.slane %v58_v27, 1  ;;  %v307_v39 = vadd.f32 %v179_v29, %v51_v4  ;;  %v20_v21 = vld [vmem:[%s911_s0 + $0x12] sm:$0x3]  ;;  %v24_v29 = vld [vmem:[%s911_s0 + $0x1a] sm:$0x3] }
  0x24   :  { %v441_v40 = vsel %vm410_vm4, %v440_v24, %v439_v36  ;;  %v308_v41 = vadd.f32 %v180_v30, %v52_v9  ;;  %v309_v42 = vadd.f32 %v181_v31, %v53_v10  ;;  %v310_v43 = vadd.f32 %v182_v33, %v54_v11 }
  0x25   :  { %v443_v46 = vsel %vm413_vm5, %v442_v25, %v441_v40  ;;  %v311_v47 = vadd.f32 %v183_v34, %v55_v16  ;;  %v312_v48 = vadd.f32 %v184_v35, %v56_v17  ;;  %v313_v49 = vadd.f32 %v185_v37, %v57_v22  ;;  %v19_v16 = vld [vmem:[%s911_s0 + $0x10] sm:$0x3]  ;;  %v21_v22 = vld [vmem:[%s911_s0 + $0x14] sm:$0x3]  ;;  %v25_v34 = vld [vmem:[%s911_s0 + $0x1c] sm:$0x3] }
  0x26   :  { %v445_v53 = vsel %vm416_vm6, %v444_v26, %v443_v46  ;;  %v314_v54 = vadd.f32 %v186_v38, %v58_v27  ;;  %v474_v55 = vrot.slane %v308_v41, 7  ;;  %v476_v56 = vrot.slane %v309_v42, 6 }
  0x27   :  { %589 = vmatmul.msk.f32.vlgmr.msra.gmra.mxu1 %vm516_vm7, %v445_v53  ;;  %v478_v59 = vrot.slane %v310_v43, 5  ;;  %v480_v60 = vrot.slane %v311_v47, 4  ;;  %v482_v61 = vrot.slane %v312_v48, 3  ;;  %v484_v62 = vrot.slane %v313_v49, 2 }
  0x28   :  { %v475_v0 = vsel %vm398_vm0, %v474_v55, %v307_v39  ;;  %v486_v1 = vrot.slane %v314_v54, 1  ;;  %v195_v2 = vrot.slane %v67_v44, 1  ;;  %v196_v3 = vrot.slane %v68_v45, 1  ;;  %v26_v39 = vld [vmem:[%s911_s0 + $0x1e] sm:$0x3] }
  0x29   :  { %v477_v4 = vsel %vm401_vm1, %v476_v56, %v475_v0  ;;  %v197_v5 = vrot.slane %v69_v50, 1  ;;  %v198_v6 = vrot.slane %v70_v51, 1  ;;  %v199_v7 = vrot.slane %v71_v52, 1  ;;  %v35_v56 = vld [vmem:[%s911_s0 + $0x30] sm:$0x3] }
  0x2a   :  { %v479_v8 = vsel %vm404_vm2, %v478_v59, %v477_v4  ;;  %v200_v9 = vrot.slane %v72_v57, 1  ;;  %v201_v10 = vrot.slane %v73_v58, 1  ;;  %v202_v11 = vrot.slane %v74_v63, 1  ;;  %v39_v0 = vld [vmem:[%s911_s0 + $0x38] sm:$0x3] }
  0x2b   :  { %v481_v12 = vsel %vm407_vm3, %v480_v60, %v479_v8  ;;  %v323_v13 = vadd.f32 %v195_v2, %v67_v44  ;;  %v324_v14 = vadd.f32 %v196_v3, %v68_v45  ;;  %v325_v15 = vadd.f32 %v197_v5, %v69_v50  ;;  %v40_v5 = vld [vmem:[%s911_s0 + $0x3a] sm:$0x3] }
  0x2c   :  { %v483_v17 = vsel %vm410_vm4, %v482_v61, %v481_v12  ;;  %v326_v18 = vadd.f32 %v198_v6, %v70_v51  ;;  %v327_v19 = vadd.f32 %v199_v7, %v71_v52  ;;  %v328_v20 = vadd.f32 %v200_v9, %v72_v57  ;;  %v36_v57 = vld [vmem:[%s911_s0 + $0x32] sm:$0x3]  ;;  %v41_v6 = vld [vmem:[%s911_s0 + $0x3c] sm:$0x3] }
  0x2d   :  { %v485_v24 = vsel %vm413_vm5, %v484_v62, %v483_v17  ;;  %v329_v25 = vadd.f32 %v201_v10, %v73_v58  ;;  %v330_v26 = vadd.f32 %v202_v11, %v74_v63  ;;  %v502_v27 = vrot.slane %v324_v14, 7  ;;  %v37_v62 = vld [vmem:[%s911_s0 + $0x34] sm:$0x3]  ;;  %v38_v63 = vld [vmem:[%s911_s0 + $0x36] sm:$0x3] }
  0x2e   :  { %v487_v30 = vsel %vm416_vm6, %v486_v1, %v485_v24  ;;  %v504_v31 = vrot.slane %v325_v15, 6  ;;  %v506_v32 = vrot.slane %v326_v18, 5  ;;  %v508_v33 = vrot.slane %v327_v19, 4  ;;  %v42_v11 = vld [vmem:[%s911_s0 + $0x3e] sm:$0x3] }
  0x2f   :  { %592 = vmatmul.msk.f32.gmra.mxu2 %vm516_vm7, %v487_v30  ;;  %v503_v35 = vsel %vm398_vm0, %v502_v27, %v323_v13  ;;  %v510_v36 = vrot.slane %v328_v20, 3  ;;  %v512_v37 = vrot.slane %v329_v25, 2  ;;  %v514_v38 = vrot.slane %v330_v26, 1 }
  0x30   :  { %v505_v40 = vsel %vm401_vm1, %v504_v31, %v503_v35  ;;  %v147_v41 = vrot.slane %v19_v16, 1  ;;  %v148_v42 = vrot.slane %v20_v21, 1  ;;  %v149_v43 = vrot.slane %v21_v22, 1 }
  0x31   :  { %v507_v44 = vsel %vm404_vm2, %v506_v32, %v505_v40  ;;  %v150_v45 = vrot.slane %v22_v23, 1  ;;  %v151_v46 = vrot.slane %v23_v28, 1  ;;  %v152_v47 = vrot.slane %v24_v29, 1 }
  0x32   :  { %v509_v48 = vsel %vm407_vm3, %v508_v33, %v507_v44  ;;  %v153_v49 = vrot.slane %v25_v34, 1  ;;  %v154_v50 = vrot.slane %v26_v39, 1  ;;  %v275_v51 = vadd.f32 %v147_v41, %v19_v16 }
  0x33   :  { %v511_v52 = vsel %vm410_vm4, %v510_v36, %v509_v48  ;;  %v276_v53 = vadd.f32 %v148_v42, %v20_v21  ;;  %v277_v54 = vadd.f32 %v149_v43, %v21_v22  ;;  %v278_v55 = vadd.f32 %v150_v45, %v22_v23 }
  0x34   :  { %v513_v58 = vsel %vm413_vm5, %v512_v37, %v511_v52  ;;  %v279_v59 = vadd.f32 %v151_v46, %v23_v28  ;;  %v280_v60 = vadd.f32 %v152_v47, %v24_v29  ;;  %v281_v61 = vadd.f32 %v153_v49, %v25_v34 }
  0x35   :  { %v515_v1 = vsel %vm416_vm6, %v514_v38, %v513_v58  ;;  %v282_v2 = vadd.f32 %v154_v50, %v26_v39  ;;  %v418_v3 = vrot.slane %v276_v53, 7  ;;  %v420_v4 = vrot.slane %v277_v54, 6 }
  0x36   :  { %594 = vmatmul.msk.f32.gmra.mxu3 %vm516_vm7, %v515_v1  ;;  %v422_v7 = vrot.slane %v278_v55, 5  ;;  %v424_v8 = vrot.slane %v279_v59, 4  ;;  %v426_v9 = vrot.slane %v280_v60, 3  ;;  %v428_v10 = vrot.slane %v281_v61, 2 }
  0x37   :  { %v419_v12 = vsel %vm398_vm0, %v418_v3, %v275_v51  ;;  %v430_v13 = vrot.slane %v282_v2, 1  ;;  %v163_v14 = vrot.slane %v35_v56, 1  ;;  %v164_v15 = vrot.slane %v36_v57, 1 }
  0x38   :  { %v421_v16 = vsel %vm401_vm1, %v420_v4, %v419_v12  ;;  %v165_v17 = vrot.slane %v37_v62, 1  ;;  %v166_v18 = vrot.slane %v38_v63, 1  ;;  %v167_v19 = vrot.slane %v39_v0, 1 }
  0x39   :  { %v423_v20 = vsel %vm404_vm2, %v422_v7, %v421_v16  ;;  %v168_v21 = vrot.slane %v40_v5, 1  ;;  %v169_v22 = vrot.slane %v41_v6, 1  ;;  %v170_v23 = vrot.slane %v42_v11, 1 }
  0x3a   :  { %v425_v24 = vsel %vm407_vm3, %v424_v8, %v423_v20  ;;  %v291_v25 = vadd.f32 %v163_v14, %v35_v56  ;;  %v292_v26 = vadd.f32 %v164_v15, %v36_v57  ;;  %v293_v27 = vadd.f32 %v165_v17, %v37_v62 }
  0x3b   :  { %v427_v28 = vsel %vm410_vm4, %v426_v9, %v425_v24  ;;  %v294_v29 = vadd.f32 %v166_v18, %v38_v63  ;;  %v295_v30 = vadd.f32 %v167_v19, %v39_v0  ;;  %v296_v31 = vadd.f32 %v168_v21, %v40_v5 }
  0x3c   :  { %v429_v32 = vsel %vm413_vm5, %v428_v10, %v427_v28  ;;  %v297_v33 = vadd.f32 %v169_v22, %v41_v6  ;;  %v298_v34 = vadd.f32 %v170_v23, %v42_v11  ;;  %v446_v35 = vrot.slane %v292_v26, 7 }
  0x3d   :  { %v431_v36 = vsel %vm416_vm6, %v430_v13, %v429_v32  ;;  %v448_v37 = vrot.slane %v293_v27, 6  ;;  %v450_v38 = vrot.slane %v294_v29, 5  ;;  %v452_v39 = vrot.slane %v295_v30, 4 }
  0x3e   :  { %588 = vmatmul.msk.f32.gmra.mxu0 %vm516_vm7, %v431_v36  ;;  %v447_v40 = vsel %vm398_vm0, %v446_v35, %v291_v25  ;;  %v454_v41 = vrot.slane %v296_v31, 3  ;;  %v456_v43 = vrot.slane %v297_v33, 2  ;;  %v458_v45 = vrot.slane %v298_v34, 1 }
  0x3f   :  { %v449_v42 = vsel %vm401_vm1, %v448_v37, %v447_v40  ;;  %vm574_vm8 = vcmask 64512  }
  0x40   :  { %v451_v44 = vsel %vm404_vm2, %v450_v38, %v449_v42 }
  0x41   :  { %v453_v46 = vsel %vm407_vm3, %v452_v39, %v451_v44 }
  0x42   :  { %v455_v47 = vsel %vm410_vm4, %v454_v41, %v453_v46 }
  0x43   :  { %v457_v48 = vsel %vm413_vm5, %v456_v43, %v455_v47 }
  0x44   :  { %v459_v49 = vsel %vm416_vm6, %v458_v45, %v457_v48 }
  0x45   :  { %590 = vmatmul.msk.f32.gmra.mxu1 %vm516_vm7, %v459_v49 }
  0x94   :  { %v562_v50 = vpop.f32.mrf.mxu2 }
  0x95   :  { %579 = vst.msk [vmem:[%s912_s2 + $0x20] sm:$0xff] %vm574_vm8, %v562_v50 }
  0x9b   :  { %v568_v51 = vpop.f32.mrf.mxu3 }
  0x9c   :  { %581 = vst.msk [vmem:[%s912_s2 + $0x30] sm:$0xff] %vm574_vm8, %v568_v51 }
  0x9d   :  { %v550_v52 = vpop.f32.mrf.mxu0 }
  0x9e   :  { %575 = vst.msk [vmem:[%s912_s2] sm:$0xff] %vm574_vm8, %v550_v52 }
  0xa4   :  { %v556_v53 = vpop.f32.mrf.mxu1 }
  0xa5   :  { %577 = vst.msk [vmem:[%s912_s2 + $0x10] sm:$0xff] %vm574_vm8, %v556_v53 }
  0xb2   :  { %v565_v54 = vpop.f32.mrf.mxu2 }
  0xb3   :  { %580 = vst.msk [vmem:[%s912_s2 + $0x28] sm:$0xff] %vm574_vm8, %v565_v54 }
  0xb9   :  { %v571_v55 = vpop.f32.mrf.mxu3 }
  0xba   :  { %582 = vst.msk [vmem:[%s912_s2 + $0x38] sm:$0xff] %vm574_vm8, %v571_v55 }
  0xbb   :  { %v553_v56 = vpop.f32.mrf.mxu0 }
  0xbc   :  { %576 = vst.msk [vmem:[%s912_s2 + $0x8] sm:$0xff] %vm574_vm8, %v553_v56 }
  0xc2   :  { %v559_v57 = vpop.f32.mrf.mxu1 }
  0xc3   :  { %578 = vst.msk [vmem:[%s912_s2 + $0x18] sm:$0xff] %vm574_vm8, %v559_v57 }

</bundles_post_ra>
